<compile_context>
chip_gen: v6e
topology: v6e:2x2x1
jax: 0.10.0
libtpu: 0.0.40
codegen_flags: <defaults>
</compile_context>

<pallas_src>
import functools

import jax
import jax.numpy as jnp
from jax.experimental import pallas as pl
from jax.experimental.pallas import tpu as pltpu


def _gru_fused_kernel(x_ref, w_i_ref, w_h_ref, b_in_ref, b_hn_ref,
                      out_ref, hid_ref, h_ref):
    """Fused input-projection + GRU recurrence over one (batch-block, T-tile).

    x_ref   : (tile_T, block_B, H) time-major embedded inputs (compute dtype)
    w_i_ref : (3, H, H) gate-major input weights,  x @ w_i[g]   (compute dtype)
    w_h_ref : (3, H, H) gate-major hidden weights, h @ w_h[g]   (compute dtype)
    b_in_ref: (3, 1, H) f32 biases [b_ir+b_hr, b_iz+b_hz, b_in]
    b_hn_ref: (1, H)    f32 hidden bias of the "new" gate (stays inside r*(.))
    out_ref : (tile_T, block_B, H) f32 hidden states for this tile
    hid_ref : (block_B, H)         f32 final hidden state (written on last tile)
    h_ref   : (block_B, H)         f32 VMEM scratch carrying h across T-tiles
    """
    t_idx = pl.program_id(1)

    @pl.when(t_idx == 0)
    def _():
        h_ref[...] = jnp.zeros_like(h_ref)

    # Loop-invariant operands hoisted once per tile (weights stay resident).
    cdt = x_ref.dtype
    w_ir, w_iz, w_in = w_i_ref[0], w_i_ref[1], w_i_ref[2]
    w_hr, w_hz, w_hn = w_h_ref[0], w_h_ref[1], w_h_ref[2]
    b_r, b_z, b_n = b_in_ref[0], b_in_ref[1], b_in_ref[2]     # (1, H) each
    b_hn = b_hn_ref[...]                                       # (1, H)

    tile_t = x_ref.shape[0]

    def step(i, h):
        x_t = x_ref[i]                                          # (block_B, H)
        h_c = h.astype(cdt)
        # Input projection fused in (no gx HBM round trip) + hidden projection.
        gxr = jnp.dot(x_t, w_ir, preferred_element_type=jnp.float32) + b_r
        gxz = jnp.dot(x_t, w_iz, preferred_element_type=jnp.float32) + b_z
        gxn = jnp.dot(x_t, w_in, preferred_element_type=jnp.float32) + b_n
        ghr = jnp.dot(h_c, w_hr, preferred_element_type=jnp.float32)
        ghz = jnp.dot(h_c, w_hz, preferred_element_type=jnp.float32)
        ghn = jnp.dot(h_c, w_hn, preferred_element_type=jnp.float32)
        # Gate math in f32 (v5e VPU/EUP have no bf16).
        r = jax.nn.sigmoid(gxr + ghr)
        z = jax.nn.sigmoid(gxz + ghz)
        n = jnp.tanh(gxn + r * (ghn + b_hn))
        h_new = n + z * (h - n)             # == (1-z)*n + z*h, one fewer VPU op
        out_ref[i] = h_new
        return h_new

    h_last = jax.lax.fori_loop(0, tile_t, step, h_ref[...], unroll=4)
    h_ref[...] = h_last                      # carry across T-tiles

    @pl.when(t_idx == pl.num_programs(1) - 1)
    def _():
        hid_ref[...] = h_last                # final hidden written exactly once


def encoder_forward(tokens, emb_table, w_ih, w_hh, b_ih, b_hh, *,
                    compute_dtype=jnp.bfloat16, tile_t=None, block_b=None):
    """Encoder.forward: embedding lookup + single-layer GRU (h0 = 0).

    tokens    : (B, T) int32
    emb_table : (V, H) f32
    w_ih, w_hh: (3H, H) f32, PyTorch GRU layout, gate order [reset, update, new]
    b_ih, b_hh: (3H,)  f32
    Returns (output (B, T, H) f32, hidden (1, B, H) f32).
    """
    B, T = tokens.shape
    H = emb_table.shape[1]
    tile_t = T if tile_t is None else tile_t
    block_b = B if block_b is None else block_b
    assert T % tile_t == 0 and B % block_b == 0

    # Embedding lookup (data-dependent gather: plain-JAX glue).  Gathering with
    # tokens.T yields the time-major (T, B, H) slab directly - no activation
    # transpose on the input side.
    x_tm = jnp.take(emb_table, tokens.T, axis=0).astype(compute_dtype)

    # Gate-major weights: w[g] such that act @ w[g] == act @ W_g^T.
    w_i = jnp.transpose(w_ih.reshape(3, H, H), (0, 2, 1)).astype(compute_dtype)
    w_h = jnp.transpose(w_hh.reshape(3, H, H), (0, 2, 1)).astype(compute_dtype)

    # Fold b_hr / b_hz into the input-side biases (they add linearly); b_hn must
    # stay in the recurrence because r multiplies (h @ W_hn + b_hn).
    b_in = jnp.concatenate([b_ih[:2 * H] + b_hh[:2 * H], b_ih[2 * H:]]
                           ).astype(jnp.float32).reshape(3, 1, H)
    b_hn = b_hh[2 * H:].astype(jnp.float32).reshape(1, H)

    n_b, n_t = B // block_b, T // tile_t

    # Scoped-VMEM budget sized to the actual working set (double-buffered x/out
    # streams + resident weights/biases/scratch), never below the 32 MiB default.
    cbytes = jnp.dtype(compute_dtype).itemsize
    ws = (2 * tile_t * block_b * H * cbytes        # x tiles (2 buffers)
          + 2 * tile_t * block_b * H * 4           # out tiles (2 buffers)
          + 2 * 3 * H * H * cbytes                 # gate-major weights
          + 4 * H * 4                              # biases
          + block_b * H * 4)                       # h carry scratch
    vmem_limit = int(min(128 << 20, max(32 << 20, 2 * ws)))

    grid_spec = pltpu.PrefetchScalarGridSpec(
        num_scalar_prefetch=0,
        grid=(n_b, n_t),
        in_specs=[
            pl.BlockSpec((tile_t, block_b, H), lambda b, t: (t, b, 0)),   # x
            pl.BlockSpec((3, H, H), lambda b, t: (0, 0, 0)),              # w_i
            pl.BlockSpec((3, H, H), lambda b, t: (0, 0, 0)),              # w_h
            pl.BlockSpec((3, 1, H), lambda b, t: (0, 0, 0)),              # b_in
            pl.BlockSpec((1, H), lambda b, t: (0, 0)),                    # b_hn
        ],
        out_specs=[
            pl.BlockSpec((tile_t, block_b, H), lambda b, t: (t, b, 0)),   # out
            pl.BlockSpec((block_b, H), lambda b, t: (b, 0)),              # hid
        ],
        scratch_shapes=[pltpu.VMEM((block_b, H), jnp.float32)],
    )

    out_tm, hid = pl.pallas_call(
        _gru_fused_kernel,
        out_shape=(jax.ShapeDtypeStruct((T, B, H), jnp.float32),
                   jax.ShapeDtypeStruct((B, H), jnp.float32)),
        grid_spec=grid_spec,
        compiler_params=pltpu.CompilerParams(
            dimension_semantics=("parallel", "arbitrary"),
            vmem_limit_bytes=vmem_limit),
    )(x_tm, w_i, w_h, b_in, b_hn)

    output = jnp.transpose(out_tm, (1, 0, 2))    # batch_first (B, T, H)
    hidden = hid[None, :, :]                     # (1, B, H)
    return output, hidden


def _reference_gru(tokens, emb_table, w_ih, w_hh, b_ih, b_hh):
    """Pure-JAX f32 reference matching torch.nn.GRU(batch_first=True)."""
    B, T = tokens.shape
    H = emb_table.shape[1]
    x = jnp.take(emb_table, tokens, axis=0)       # (B, T, H)

    def step(h, x_t):
        gx = x_t @ w_ih.T + b_ih
        gh = h @ w_hh.T + b_hh
        r = jax.nn.sigmoid(gx[:, :H] + gh[:, :H])
        z = jax.nn.sigmoid(gx[:, H:2 * H] + gh[:, H:2 * H])
        n = jnp.tanh(gx[:, 2 * H:] + r * gh[:, 2 * H:])
        h_new = (1.0 - z) * n + z * h
        return h_new, h_new

    h0 = jnp.zeros((B, H), jnp.float32)
    h_T, outs = jax.lax.scan(step, h0, jnp.transpose(x, (1, 0, 2)))
    return jnp.transpose(outs, (1, 0, 2)), h_T[None]


if __name__ == "__main__":
    # Module hyperparameters (dropout is defined but unused in Encoder.forward).
    vocab_size, hidden_size = 50, 32
    B, T = 2, 8

    key = jax.random.PRNGKey(0)
    k_emb, k_wih, k_whh, k_bih, k_bhh, k_tok = jax.random.split(key, 6)

    emb_table = jax.random.normal(k_emb, (vocab_size, hidden_size), jnp.float32) * 0.1
    w_ih = jax.random.normal(k_wih, (3 * hidden_size, hidden_size), jnp.float32) * 0.1
    w_hh = jax.random.normal(k_whh, (3 * hidden_size, hidden_size), jnp.float32) * 0.1
    b_ih = jax.random.normal(k_bih, (3 * hidden_size,), jnp.float32) * 0.1
    b_hh = jax.random.normal(k_bhh, (3 * hidden_size,), jnp.float32) * 0.1
    tokens = jax.random.randint(k_tok, (B, T), 0, vocab_size, jnp.int32)

    ref_out, ref_hid = _reference_gru(tokens, emb_table, w_ih, w_hh, b_ih, b_hh)

    # tile_t=4 so the test exercises the T-tiled carry path (grid of 2 T-tiles).
    # (1) f32 mode: exact check against the reference.
    run_f32 = jax.jit(functools.partial(
        encoder_forward, compute_dtype=jnp.float32, tile_t=4))
    out32, hid32 = run_f32(tokens, emb_table, w_ih, w_hh, b_ih, b_hh)
    out32 = jax.block_until_ready(out32)
    hid32 = jax.block_until_ready(hid32)
    assert out32.shape == (B, T, hidden_size)
    assert hid32.shape == (1, B, hidden_size)
    assert jnp.allclose(out32, ref_out, atol=1e-5, rtol=1e-5)
    assert jnp.allclose(hid32, ref_hid, atol=1e-5, rtol=1e-5)

    # (2) bf16-matmul mode (the perf default): looser tolerance, f32 gate math.
    run_bf16 = jax.jit(functools.partial(
        encoder_forward, compute_dtype=jnp.bfloat16, tile_t=4))
    out_bf, hid_bf = run_bf16(tokens, emb_table, w_ih, w_hh, b_ih, b_hh)
    out_bf = jax.block_until_ready(out_bf)
    hid_bf = jax.block_until_ready(hid_bf)
    assert out_bf.shape == (B, T, hidden_size)
    assert hid_bf.shape == (1, B, hidden_size)
    assert jnp.allclose(out_bf, ref_out, atol=1e-2, rtol=1e-2)
    assert jnp.allclose(hid_bf, ref_hid, atol=1e-2, rtol=1e-2)

    print("KERNEL_OK")
</pallas_src>

<mosaic_0001>
module attributes {stable_mosaic.version = 11 : i64} {
  func.func @_gru_fused_kernel(%arg0: i32, %arg1: i32, %arg2: memref<4x2x32xf32, #tpu.memory_space<vmem>>, %arg3: memref<3x32x32xf32, #tpu.memory_space<vmem>>, %arg4: memref<3x32x32xf32, #tpu.memory_space<vmem>>, %arg5: memref<3x1x32xf32, #tpu.memory_space<vmem>>, %arg6: memref<1x32xf32, #tpu.memory_space<vmem>>, %arg7: memref<4x2x32xf32, #tpu.memory_space<vmem>>, %arg8: memref<2x32xf32, #tpu.memory_space<vmem>>, %arg9: memref<2x32xf32, #tpu.memory_space<vmem>>) attributes {dimension_semantics = [#tpu.dimension_semantics<parallel>, #tpu.dimension_semantics<arbitrary>], iteration_bounds = array<i64: 1, 2>, scalar_prefetch = 0 : i64, scratch_operands = 1 : i64, tpu.core_type = #tpu.core_type<tc>, window_params = [{transform_indices = @transform_0, window_bounds = array<i64: 4, 2, 32>}, {pipeline_mode = #tpu.pipeline_mode<synchronous>, transform_indices = @transform_1, window_bounds = array<i64: 3, 32, 32>}, {pipeline_mode = #tpu.pipeline_mode<synchronous>, transform_indices = @transform_2, window_bounds = array<i64: 3, 32, 32>}, {pipeline_mode = #tpu.pipeline_mode<synchronous>, transform_indices = @transform_3, window_bounds = array<i64: 3, 1, 32>}, {pipeline_mode = #tpu.pipeline_mode<synchronous>, transform_indices = @transform_4, window_bounds = array<i64: 1, 32>}, {transform_indices = @transform_5, window_bounds = array<i64: 4, 2, 32>}, {transform_indices = @transform_6, window_bounds = array<i64: 2, 32>}]} {
    %c0_i32 = arith.constant 0 : i32
    %0 = arith.cmpi eq, %arg1, %c0_i32 : i32
    %1 = arith.extui %0 : i1 to i32
    %c0_i32_0 = arith.constant 0 : i32
    %2 = arith.cmpi ne, %1, %c0_i32_0 : i32
    scf.if %2 {
      %cst_81 = arith.constant 0.000000e+00 : f32
      %183 = vector.broadcast %cst_81 : f32 to vector<2x32xf32>
      %c0_82 = arith.constant 0 : index
      %c0_83 = arith.constant 0 : index
      %184 = vector.load %arg9[%c0_82, %c0_83] : memref<2x32xf32, #tpu.memory_space<vmem>>, vector<2x32xf32>
      tpu.vector_store %arg9[%c0_82, %c0_83], %183 {strides = array<i32>} : memref<2x32xf32, #tpu.memory_space<vmem>>, vector<2x32xf32>,
    } else {
    }
    %c0 = arith.constant 0 : index
    %c0_1 = arith.constant 0 : index
    %c0_2 = arith.constant 0 : index
    %3 = vector.load %arg3[%c0, %c0_1, %c0_2] : memref<3x32x32xf32, #tpu.memory_space<vmem>>, vector<1x32x32xf32>
    %4 = vector.shape_cast %3 : vector<1x32x32xf32> to vector<32x32xf32>
    %c1 = arith.constant 1 : index
    %c0_3 = arith.constant 0 : index
    %c0_4 = arith.constant 0 : index
    %5 = vector.load %arg3[%c1, %c0_3, %c0_4] : memref<3x32x32xf32, #tpu.memory_space<vmem>>, vector<1x32x32xf32>
    %6 = vector.shape_cast %5 : vector<1x32x32xf32> to vector<32x32xf32>
    %c2 = arith.constant 2 : index
    %c0_5 = arith.constant 0 : index
    %c0_6 = arith.constant 0 : index
    %7 = vector.load %arg3[%c2, %c0_5, %c0_6] : memref<3x32x32xf32, #tpu.memory_space<vmem>>, vector<1x32x32xf32>
    %8 = vector.shape_cast %7 : vector<1x32x32xf32> to vector<32x32xf32>
    %c0_7 = arith.constant 0 : index
    %c0_8 = arith.constant 0 : index
    %c0_9 = arith.constant 0 : index
    %9 = vector.load %arg4[%c0_7, %c0_8, %c0_9] : memref<3x32x32xf32, #tpu.memory_space<vmem>>, vector<1x32x32xf32>
    %10 = vector.shape_cast %9 : vector<1x32x32xf32> to vector<32x32xf32>
    %c1_10 = arith.constant 1 : index
    %c0_11 = arith.constant 0 : index
    %c0_12 = arith.constant 0 : index
    %11 = vector.load %arg4[%c1_10, %c0_11, %c0_12] : memref<3x32x32xf32, #tpu.memory_space<vmem>>, vector<1x32x32xf32>
    %12 = vector.shape_cast %11 : vector<1x32x32xf32> to vector<32x32xf32>
    %c2_13 = arith.constant 2 : index
    %c0_14 = arith.constant 0 : index
    %c0_15 = arith.constant 0 : index
    %13 = vector.load %arg4[%c2_13, %c0_14, %c0_15] : memref<3x32x32xf32, #tpu.memory_space<vmem>>, vector<1x32x32xf32>
    %14 = vector.shape_cast %13 : vector<1x32x32xf32> to vector<32x32xf32>
    %c0_16 = arith.constant 0 : index
    %c0_17 = arith.constant 0 : index
    %c0_18 = arith.constant 0 : index
    %15 = vector.load %arg5[%c0_16, %c0_17, %c0_18] : memref<3x1x32xf32, #tpu.memory_space<vmem>>, vector<1x1x32xf32>
    %16 = vector.shape_cast %15 : vector<1x1x32xf32> to vector<1x32xf32>
    %c1_19 = arith.constant 1 : index
    %c0_20 = arith.constant 0 : index
    %c0_21 = arith.constant 0 : index
    %17 = vector.load %arg5[%c1_19, %c0_20, %c0_21] : memref<3x1x32xf32, #tpu.memory_space<vmem>>, vector<1x1x32xf32>
    %18 = vector.shape_cast %17 : vector<1x1x32xf32> to vector<1x32xf32>
    %c2_22 = arith.constant 2 : index
    %c0_23 = arith.constant 0 : index
    %c0_24 = arith.constant 0 : index
    %19 = vector.load %arg5[%c2_22, %c0_23, %c0_24] : memref<3x1x32xf32, #tpu.memory_space<vmem>>, vector<1x1x32xf32>
    %20 = vector.shape_cast %19 : vector<1x1x32xf32> to vector<1x32xf32>
    %c0_25 = arith.constant 0 : index
    %c0_26 = arith.constant 0 : index
    %21 = vector.load %arg6[%c0_25, %c0_26] : memref<1x32xf32, #tpu.memory_space<vmem>>, vector<1x32xf32>
    %c0_27 = arith.constant 0 : index
    %c0_28 = arith.constant 0 : index
    %22 = vector.load %arg9[%c0_27, %c0_28] : memref<2x32xf32, #tpu.memory_space<vmem>>, vector<2x32xf32>
    %c0_i32_29 = arith.constant 0 : i32
    %23 = arith.index_cast %c0_i32_29 : i32 to index
    %c0_30 = arith.constant 0 : index
    %c0_31 = arith.constant 0 : index
    %24 = vector.load %arg2[%23, %c0_30, %c0_31] : memref<4x2x32xf32, #tpu.memory_space<vmem>>, vector<1x2x32xf32>
    %25 = vector.shape_cast %24 : vector<1x2x32xf32> to vector<2x32xf32>
    %cst = arith.constant dense<0.000000e+00> : vector<2x32xf32>
    %26 = tpu.matmul %25, %4, %cst {dimension_numbers = #tpu.dot_dimension_numbers<[1], [0], [0], [1], [0, 0, 1, 1], [], []>} : vector<2x32xf32>, vector<32x32xf32>, vector<2x32xf32> -> vector<2x32xf32>
    %27 = vector.broadcast %16 : vector<1x32xf32> to vector<2x32xf32>
    %28 = arith.addf %26, %27 : vector<2x32xf32>
    %cst_32 = arith.constant dense<0.000000e+00> : vector<2x32xf32>
    %29 = tpu.matmul %25, %6, %cst_32 {dimension_numbers = #tpu.dot_dimension_numbers<[1], [0], [0], [1], [0, 0, 1, 1], [], []>} : vector<2x32xf32>, vector<32x32xf32>, vector<2x32xf32> -> vector<2x32xf32>
    %30 = vector.broadcast %18 : vector<1x32xf32> to vector<2x32xf32>
    %31 = arith.addf %29, %30 : vector<2x32xf32>
    %cst_33 = arith.constant dense<0.000000e+00> : vector<2x32xf32>
    %32 = tpu.matmul %25, %8, %cst_33 {dimension_numbers = #tpu.dot_dimension_numbers<[1], [0], [0], [1], [0, 0, 1, 1], [], []>} : vector<2x32xf32>, vector<32x32xf32>, vector<2x32xf32> -> vector<2x32xf32>
    %33 = vector.broadcast %20 : vector<1x32xf32> to vector<2x32xf32>
    %34 = arith.addf %32, %33 : vector<2x32xf32>
    %cst_34 = arith.constant dense<0.000000e+00> : vector<2x32xf32>
    %35 = tpu.matmul %22, %10, %cst_34 {dimension_numbers = #tpu.dot_dimension_numbers<[1], [0], [0], [1], [0, 0, 1, 1], [], []>} : vector<2x32xf32>, vector<32x32xf32>, vector<2x32xf32> -> vector<2x32xf32>
    %cst_35 = arith.constant dense<0.000000e+00> : vector<2x32xf32>
    %36 = tpu.matmul %22, %12, %cst_35 {dimension_numbers = #tpu.dot_dimension_numbers<[1], [0], [0], [1], [0, 0, 1, 1], [], []>} : vector<2x32xf32>, vector<32x32xf32>, vector<2x32xf32> -> vector<2x32xf32>
    %cst_36 = arith.constant dense<0.000000e+00> : vector<2x32xf32>
    %37 = tpu.matmul %22, %14, %cst_36 {dimension_numbers = #tpu.dot_dimension_numbers<[1], [0], [0], [1], [0, 0, 1, 1], [], []>} : vector<2x32xf32>, vector<32x32xf32>, vector<2x32xf32> -> vector<2x32xf32>
    %38 = arith.addf %28, %35 : vector<2x32xf32>
    %39 = arith.negf %38 : vector<2x32xf32>
    %40 = math.exp %39 : vector<2x32xf32>
    %cst_37 = arith.constant 1.000000e+00 : f32
    %41 = vector.broadcast %cst_37 : f32 to vector<2x32xf32>
    %42 = arith.addf %41, %40 : vector<2x32xf32>
    %43 = arith.divf %41, %42 : vector<2x32xf32>
    %44 = arith.addf %31, %36 : vector<2x32xf32>
    %45 = arith.negf %44 : vector<2x32xf32>
    %46 = math.exp %45 : vector<2x32xf32>
    %cst_38 = arith.constant 1.000000e+00 : f32
    %47 = vector.broadcast %cst_38 : f32 to vector<2x32xf32>
    %48 = arith.addf %47, %46 : vector<2x32xf32>
    %49 = arith.divf %47, %48 : vector<2x32xf32>
    %50 = vector.broadcast %21 : vector<1x32xf32> to vector<2x32xf32>
    %51 = arith.addf %37, %50 : vector<2x32xf32>
    %52 = arith.mulf %43, %51 : vector<2x32xf32>
    %53 = arith.addf %34, %52 : vector<2x32xf32>
    %54 = math.tanh %53 : vector<2x32xf32>
    %55 = arith.subf %22, %54 : vector<2x32xf32>
    %56 = arith.mulf %49, %55 : vector<2x32xf32>
    %57 = arith.addf %54, %56 : vector<2x32xf32>
    %58 = arith.index_cast %c0_i32_29 : i32 to index
    %c0_39 = arith.constant 0 : index
    %c0_40 = arith.constant 0 : index
    %59 = vector.load %arg7[%58, %c0_39, %c0_40] : memref<4x2x32xf32, #tpu.memory_space<vmem>>, vector<1x2x32xf32>
    %60 = vector.shape_cast %59 : vector<1x2x32xf32> to vector<2x32xf32>
    %61 = vector.shape_cast %57 : vector<2x32xf32> to vector<1x2x32xf32>
    tpu.vector_store %arg7[%58, %c0_39, %c0_40], %61 {strides = array<i32>} : memref<4x2x32xf32, #tpu.memory_space<vmem>>, vector<1x2x32xf32>,
    %c1_i32 = arith.constant 1 : i32
    %62 = arith.index_cast %c1_i32 : i32 to index
    %c0_41 = arith.constant 0 : index
    %c0_42 = arith.constant 0 : index
    %63 = vector.load %arg2[%62, %c0_41, %c0_42] : memref<4x2x32xf32, #tpu.memory_space<vmem>>, vector<1x2x32xf32>
    %64 = vector.shape_cast %63 : vector<1x2x32xf32> to vector<2x32xf32>
    %cst_43 = arith.constant dense<0.000000e+00> : vector<2x32xf32>
    %65 = tpu.matmul %64, %4, %cst_43 {dimension_numbers = #tpu.dot_dimension_numbers<[1], [0], [0], [1], [0, 0, 1, 1], [], []>} : vector<2x32xf32>, vector<32x32xf32>, vector<2x32xf32> -> vector<2x32xf32>
    %66 = vector.broadcast %16 : vector<1x32xf32> to vector<2x32xf32>
    %67 = arith.addf %65, %66 : vector<2x32xf32>
    %cst_44 = arith.constant dense<0.000000e+00> : vector<2x32xf32>
    %68 = tpu.matmul %64, %6, %cst_44 {dimension_numbers = #tpu.dot_dimension_numbers<[1], [0], [0], [1], [0, 0, 1, 1], [], []>} : vector<2x32xf32>, vector<32x32xf32>, vector<2x32xf32> -> vector<2x32xf32>
    %69 = vector.broadcast %18 : vector<1x32xf32> to vector<2x32xf32>
    %70 = arith.addf %68, %69 : vector<2x32xf32>
    %cst_45 = arith.constant dense<0.000000e+00> : vector<2x32xf32>
    %71 = tpu.matmul %64, %8, %cst_45 {dimension_numbers = #tpu.dot_dimension_numbers<[1], [0], [0], [1], [0, 0, 1, 1], [], []>} : vector<2x32xf32>, vector<32x32xf32>, vector<2x32xf32> -> vector<2x32xf32>
    %72 = vector.broadcast %20 : vector<1x32xf32> to vector<2x32xf32>
    %73 = arith.addf %71, %72 : vector<2x32xf32>
    %cst_46 = arith.constant dense<0.000000e+00> : vector<2x32xf32>
    %74 = tpu.matmul %57, %10, %cst_46 {dimension_numbers = #tpu.dot_dimension_numbers<[1], [0], [0], [1], [0, 0, 1, 1], [], []>} : vector<2x32xf32>, vector<32x32xf32>, vector<2x32xf32> -> vector<2x32xf32>
    %cst_47 = arith.constant dense<0.000000e+00> : vector<2x32xf32>
    %75 = tpu.matmul %57, %12, %cst_47 {dimension_numbers = #tpu.dot_dimension_numbers<[1], [0], [0], [1], [0, 0, 1, 1], [], []>} : vector<2x32xf32>, vector<32x32xf32>, vector<2x32xf32> -> vector<2x32xf32>
    %cst_48 = arith.constant dense<0.000000e+00> : vector<2x32xf32>
    %76 = tpu.matmul %57, %14, %cst_48 {dimension_numbers = #tpu.dot_dimension_numbers<[1], [0], [0], [1], [0, 0, 1, 1], [], []>} : vector<2x32xf32>, vector<32x32xf32>, vector<2x32xf32> -> vector<2x32xf32>
    %77 = arith.addf %67, %74 : vector<2x32xf32>
    %78 = arith.negf %77 : vector<2x32xf32>
    %79 = math.exp %78 : vector<2x32xf32>
    %cst_49 = arith.constant 1.000000e+00 : f32
    %80 = vector.broadcast %cst_49 : f32 to vector<2x32xf32>
    %81 = arith.addf %80, %79 : vector<2x32xf32>
    %82 = arith.divf %80, %81 : vector<2x32xf32>
    %83 = arith.addf %70, %75 : vector<2x32xf32>
    %84 = arith.negf %83 : vector<2x32xf32>
    %85 = math.exp %84 : vector<2x32xf32>
    %cst_50 = arith.constant 1.000000e+00 : f32
    %86 = vector.broadcast %cst_50 : f32 to vector<2x32xf32>
    %87 = arith.addf %86, %85 : vector<2x32xf32>
    %88 = arith.divf %86, %87 : vector<2x32xf32>
    %89 = vector.broadcast %21 : vector<1x32xf32> to vector<2x32xf32>
    %90 = arith.addf %76, %89 : vector<2x32xf32>
    %91 = arith.mulf %82, %90 : vector<2x32xf32>
    %92 = arith.addf %73, %91 : vector<2x32xf32>
    %93 = math.tanh %92 : vector<2x32xf32>
    %94 = arith.subf %57, %93 : vector<2x32xf32>
    %95 = arith.mulf %88, %94 : vector<2x32xf32>
    %96 = arith.addf %93, %95 : vector<2x32xf32>
    %97 = arith.index_cast %c1_i32 : i32 to index
    %c0_51 = arith.constant 0 : index
    %c0_52 = arith.constant 0 : index
    %98 = vector.load %arg7[%97, %c0_51, %c0_52] : memref<4x2x32xf32, #tpu.memory_space<vmem>>, vector<1x2x32xf32>
    %99 = vector.shape_cast %98 : vector<1x2x32xf32> to vector<2x32xf32>
    %100 = vector.shape_cast %96 : vector<2x32xf32> to vector<1x2x32xf32>
    tpu.vector_store %arg7[%97, %c0_51, %c0_52], %100 {strides = array<i32>} : memref<4x2x32xf32, #tpu.memory_space<vmem>>, vector<1x2x32xf32>,
    %c2_i32 = arith.constant 2 : i32
    %101 = arith.index_cast %c2_i32 : i32 to index
    %c0_53 = arith.constant 0 : index
    %c0_54 = arith.constant 0 : index
    %102 = vector.load %arg2[%101, %c0_53, %c0_54] : memref<4x2x32xf32, #tpu.memory_space<vmem>>, vector<1x2x32xf32>
    %103 = vector.shape_cast %102 : vector<1x2x32xf32> to vector<2x32xf32>
    %cst_55 = arith.constant dense<0.000000e+00> : vector<2x32xf32>
    %104 = tpu.matmul %103, %4, %cst_55 {dimension_numbers = #tpu.dot_dimension_numbers<[1], [0], [0], [1], [0, 0, 1, 1], [], []>} : vector<2x32xf32>, vector<32x32xf32>, vector<2x32xf32> -> vector<2x32xf32>
    %105 = vector.broadcast %16 : vector<1x32xf32> to vector<2x32xf32>
    %106 = arith.addf %104, %105 : vector<2x32xf32>
    %cst_56 = arith.constant dense<0.000000e+00> : vector<2x32xf32>
    %107 = tpu.matmul %103, %6, %cst_56 {dimension_numbers = #tpu.dot_dimension_numbers<[1], [0], [0], [1], [0, 0, 1, 1], [], []>} : vector<2x32xf32>, vector<32x32xf32>, vector<2x32xf32> -> vector<2x32xf32>
    %108 = vector.broadcast %18 : vector<1x32xf32> to vector<2x32xf32>
    %109 = arith.addf %107, %108 : vector<2x32xf32>
    %cst_57 = arith.constant dense<0.000000e+00> : vector<2x32xf32>
    %110 = tpu.matmul %103, %8, %cst_57 {dimension_numbers = #tpu.dot_dimension_numbers<[1], [0], [0], [1], [0, 0, 1, 1], [], []>} : vector<2x32xf32>, vector<32x32xf32>, vector<2x32xf32> -> vector<2x32xf32>
    %111 = vector.broadcast %20 : vector<1x32xf32> to vector<2x32xf32>
    %112 = arith.addf %110, %111 : vector<2x32xf32>
    %cst_58 = arith.constant dense<0.000000e+00> : vector<2x32xf32>
    %113 = tpu.matmul %96, %10, %cst_58 {dimension_numbers = #tpu.dot_dimension_numbers<[1], [0], [0], [1], [0, 0, 1, 1], [], []>} : vector<2x32xf32>, vector<32x32xf32>, vector<2x32xf32> -> vector<2x32xf32>
    %cst_59 = arith.constant dense<0.000000e+00> : vector<2x32xf32>
    %114 = tpu.matmul %96, %12, %cst_59 {dimension_numbers = #tpu.dot_dimension_numbers<[1], [0], [0], [1], [0, 0, 1, 1], [], []>} : vector<2x32xf32>, vector<32x32xf32>, vector<2x32xf32> -> vector<2x32xf32>
    %cst_60 = arith.constant dense<0.000000e+00> : vector<2x32xf32>
    %115 = tpu.matmul %96, %14, %cst_60 {dimension_numbers = #tpu.dot_dimension_numbers<[1], [0], [0], [1], [0, 0, 1, 1], [], []>} : vector<2x32xf32>, vector<32x32xf32>, vector<2x32xf32> -> vector<2x32xf32>
    %116 = arith.addf %106, %113 : vector<2x32xf32>
    %117 = arith.negf %116 : vector<2x32xf32>
    %118 = math.exp %117 : vector<2x32xf32>
    %cst_61 = arith.constant 1.000000e+00 : f32
    %119 = vector.broadcast %cst_61 : f32 to vector<2x32xf32>
    %120 = arith.addf %119, %118 : vector<2x32xf32>
    %121 = arith.divf %119, %120 : vector<2x32xf32>
    %122 = arith.addf %109, %114 : vector<2x32xf32>
    %123 = arith.negf %122 : vector<2x32xf32>
    %124 = math.exp %123 : vector<2x32xf32>
    %cst_62 = arith.constant 1.000000e+00 : f32
    %125 = vector.broadcast %cst_62 : f32 to vector<2x32xf32>
    %126 = arith.addf %125, %124 : vector<2x32xf32>
    %127 = arith.divf %125, %126 : vector<2x32xf32>
    %128 = vector.broadcast %21 : vector<1x32xf32> to vector<2x32xf32>
    %129 = arith.addf %115, %128 : vector<2x32xf32>
    %130 = arith.mulf %121, %129 : vector<2x32xf32>
    %131 = arith.addf %112, %130 : vector<2x32xf32>
    %132 = math.tanh %131 : vector<2x32xf32>
    %133 = arith.subf %96, %132 : vector<2x32xf32>
    %134 = arith.mulf %127, %133 : vector<2x32xf32>
    %135 = arith.addf %132, %134 : vector<2x32xf32>
    %136 = arith.index_cast %c2_i32 : i32 to index
    %c0_63 = arith.constant 0 : index
    %c0_64 = arith.constant 0 : index
    %137 = vector.load %arg7[%136, %c0_63, %c0_64] : memref<4x2x32xf32, #tpu.memory_space<vmem>>, vector<1x2x32xf32>
    %138 = vector.shape_cast %137 : vector<1x2x32xf32> to vector<2x32xf32>
    %139 = vector.shape_cast %135 : vector<2x32xf32> to vector<1x2x32xf32>
    tpu.vector_store %arg7[%136, %c0_63, %c0_64], %139 {strides = array<i32>} : memref<4x2x32xf32, #tpu.memory_space<vmem>>, vector<1x2x32xf32>,
    %c3_i32 = arith.constant 3 : i32
    %140 = arith.index_cast %c3_i32 : i32 to index
    %c0_65 = arith.constant 0 : index
    %c0_66 = arith.constant 0 : index
    %141 = vector.load %arg2[%140, %c0_65, %c0_66] : memref<4x2x32xf32, #tpu.memory_space<vmem>>, vector<1x2x32xf32>
    %142 = vector.shape_cast %141 : vector<1x2x32xf32> to vector<2x32xf32>
    %cst_67 = arith.constant dense<0.000000e+00> : vector<2x32xf32>
    %143 = tpu.matmul %142, %4, %cst_67 {dimension_numbers = #tpu.dot_dimension_numbers<[1], [0], [0], [1], [0, 0, 1, 1], [], []>} : vector<2x32xf32>, vector<32x32xf32>, vector<2x32xf32> -> vector<2x32xf32>
    %144 = vector.broadcast %16 : vector<1x32xf32> to vector<2x32xf32>
    %145 = arith.addf %143, %144 : vector<2x32xf32>
    %cst_68 = arith.constant dense<0.000000e+00> : vector<2x32xf32>
    %146 = tpu.matmul %142, %6, %cst_68 {dimension_numbers = #tpu.dot_dimension_numbers<[1], [0], [0], [1], [0, 0, 1, 1], [], []>} : vector<2x32xf32>, vector<32x32xf32>, vector<2x32xf32> -> vector<2x32xf32>
    %147 = vector.broadcast %18 : vector<1x32xf32> to vector<2x32xf32>
    %148 = arith.addf %146, %147 : vector<2x32xf32>
    %cst_69 = arith.constant dense<0.000000e+00> : vector<2x32xf32>
    %149 = tpu.matmul %142, %8, %cst_69 {dimension_numbers = #tpu.dot_dimension_numbers<[1], [0], [0], [1], [0, 0, 1, 1], [], []>} : vector<2x32xf32>, vector<32x32xf32>, vector<2x32xf32> -> vector<2x32xf32>
    %150 = vector.broadcast %20 : vector<1x32xf32> to vector<2x32xf32>
    %151 = arith.addf %149, %150 : vector<2x32xf32>
    %cst_70 = arith.constant dense<0.000000e+00> : vector<2x32xf32>
    %152 = tpu.matmul %135, %10, %cst_70 {dimension_numbers = #tpu.dot_dimension_numbers<[1], [0], [0], [1], [0, 0, 1, 1], [], []>} : vector<2x32xf32>, vector<32x32xf32>, vector<2x32xf32> -> vector<2x32xf32>
    %cst_71 = arith.constant dense<0.000000e+00> : vector<2x32xf32>
    %153 = tpu.matmul %135, %12, %cst_71 {dimension_numbers = #tpu.dot_dimension_numbers<[1], [0], [0], [1], [0, 0, 1, 1], [], []>} : vector<2x32xf32>, vector<32x32xf32>, vector<2x32xf32> -> vector<2x32xf32>
    %cst_72 = arith.constant dense<0.000000e+00> : vector<2x32xf32>
    %154 = tpu.matmul %135, %14, %cst_72 {dimension_numbers = #tpu.dot_dimension_numbers<[1], [0], [0], [1], [0, 0, 1, 1], [], []>} : vector<2x32xf32>, vector<32x32xf32>, vector<2x32xf32> -> vector<2x32xf32>
    %155 = arith.addf %145, %152 : vector<2x32xf32>
    %156 = arith.negf %155 : vector<2x32xf32>
    %157 = math.exp %156 : vector<2x32xf32>
    %cst_73 = arith.constant 1.000000e+00 : f32
    %158 = vector.broadcast %cst_73 : f32 to vector<2x32xf32>
    %159 = arith.addf %158, %157 : vector<2x32xf32>
    %160 = arith.divf %158, %159 : vector<2x32xf32>
    %161 = arith.addf %148, %153 : vector<2x32xf32>
    %162 = arith.negf %161 : vector<2x32xf32>
    %163 = math.exp %162 : vector<2x32xf32>
    %cst_74 = arith.constant 1.000000e+00 : f32
    %164 = vector.broadcast %cst_74 : f32 to vector<2x32xf32>
    %165 = arith.addf %164, %163 : vector<2x32xf32>
    %166 = arith.divf %164, %165 : vector<2x32xf32>
    %167 = vector.broadcast %21 : vector<1x32xf32> to vector<2x32xf32>
    %168 = arith.addf %154, %167 : vector<2x32xf32>
    %169 = arith.mulf %160, %168 : vector<2x32xf32>
    %170 = arith.addf %151, %169 : vector<2x32xf32>
    %171 = math.tanh %170 : vector<2x32xf32>
    %172 = arith.subf %135, %171 : vector<2x32xf32>
    %173 = arith.mulf %166, %172 : vector<2x32xf32>
    %174 = arith.addf %171, %173 : vector<2x32xf32>
    %175 = arith.index_cast %c3_i32 : i32 to index
    %c0_75 = arith.constant 0 : index
    %c0_76 = arith.constant 0 : index
    %176 = vector.load %arg7[%175, %c0_75, %c0_76] : memref<4x2x32xf32, #tpu.memory_space<vmem>>, vector<1x2x32xf32>
    %177 = vector.shape_cast %176 : vector<1x2x32xf32> to vector<2x32xf32>
    %178 = vector.shape_cast %174 : vector<2x32xf32> to vector<1x2x32xf32>
    tpu.vector_store %arg7[%175, %c0_75, %c0_76], %178 {strides = array<i32>} : memref<4x2x32xf32, #tpu.memory_space<vmem>>, vector<1x2x32xf32>,
    %c4_i32 = arith.constant 4 : i32
    %c0_77 = arith.constant 0 : index
    %c0_78 = arith.constant 0 : index
    %179 = vector.load %arg9[%c0_77, %c0_78] : memref<2x32xf32, #tpu.memory_space<vmem>>, vector<2x32xf32>
    tpu.vector_store %arg9[%c0_77, %c0_78], %174 {strides = array<i32>} : memref<2x32xf32, #tpu.memory_space<vmem>>, vector<2x32xf32>,
    %c1_i32_79 = arith.constant 1 : i32
    %180 = arith.cmpi eq, %arg1, %c1_i32_79 : i32
    %181 = arith.extui %180 : i1 to i32
    %c0_i32_80 = arith.constant 0 : i32
    %182 = arith.cmpi ne, %181, %c0_i32_80 : i32
    scf.if %182 {
      %c0_81 = arith.constant 0 : index
      %c0_82 = arith.constant 0 : index
      %183 = vector.load %arg8[%c0_81, %c0_82] : memref<2x32xf32, #tpu.memory_space<vmem>>, vector<2x32xf32>
      tpu.vector_store %arg8[%c0_81, %c0_82], %174 {strides = array<i32>} : memref<2x32xf32, #tpu.memory_space<vmem>>, vector<2x32xf32>,
    } else {
    }
    return
  }
  func.func @transform_0(%arg0: i32, %arg1: i32) -> (i32, i32, i32) {
    %c0_i32 = arith.constant 0 : i32
    %c0_i32_0 = arith.constant 0 : i32
    return %arg1, %arg0, %c0_i32 : i32, i32, i32
  }
  func.func @transform_1(%arg0: i32, %arg1: i32) -> (i32, i32, i32) {
    %c0_i32 = arith.constant 0 : i32
    %c0_i32_0 = arith.constant 0 : i32
    %c0_i32_1 = arith.constant 0 : i32
    %c0_i32_2 = arith.constant 0 : i32
    return %c0_i32, %c0_i32_0, %c0_i32_1 : i32, i32, i32
  }
  func.func @transform_2(%arg0: i32, %arg1: i32) -> (i32, i32, i32) {
    %c0_i32 = arith.constant 0 : i32
    %c0_i32_0 = arith.constant 0 : i32
    %c0_i32_1 = arith.constant 0 : i32
    %c0_i32_2 = arith.constant 0 : i32
    return %c0_i32, %c0_i32_0, %c0_i32_1 : i32, i32, i32
  }
  func.func @transform_3(%arg0: i32, %arg1: i32) -> (i32, i32, i32) {
    %c0_i32 = arith.constant 0 : i32
    %c0_i32_0 = arith.constant 0 : i32
    %c0_i32_1 = arith.constant 0 : i32
    %c0_i32_2 = arith.constant 0 : i32
    return %c0_i32, %c0_i32_0, %c0_i32_1 : i32, i32, i32
  }
  func.func @transform_4(%arg0: i32, %arg1: i32) -> (i32, i32) {
    %c0_i32 = arith.constant 0 : i32
    %c0_i32_0 = arith.constant 0 : i32
    %c0_i32_1 = arith.constant 0 : i32
    return %c0_i32, %c0_i32_0 : i32, i32
  }
  func.func @transform_5(%arg0: i32, %arg1: i32) -> (i32, i32, i32) {
    %c0_i32 = arith.constant 0 : i32
    %c0_i32_0 = arith.constant 0 : i32
    return %arg1, %arg0, %c0_i32 : i32, i32, i32
  }
  func.func @transform_6(%arg0: i32, %arg1: i32) -> (i32, i32) {
    %c0_i32 = arith.constant 0 : i32
    %c0_i32_0 = arith.constant 0 : i32
    return %arg0, %c0_i32 : i32, i32
  }
}

</mosaic_0001>

<bundles_post_ra>
// kernel: encoder_forward.1
= control target key start
LH: loop header
LB: loop body
LE: loop exit
PB: predicated region body
PF: predicated region fallthrough
CT: control target
= control target key end

     0   :  { %12 = vsyncpa [#allocation4], 0  ;;  %s2891_s21 = smov 0   ;;  %s2893_s22 = smov 0   ;;  %s3405_s0 = inlined_call_operand.vmem [shape: f32[8,2,32], index: 0, kind: input, shape index: {}]   ;;  %s3406_s1 = inlined_call_operand.vmem [shape: f32[3,32,32], index: 1, kind: input, shape index: {}]   ;;  %s3407_s2 = inlined_call_operand.vmem [shape: f32[3,32,32], index: 2, kind: input, shape index: {}]   ;;  %s3408_s3 = inlined_call_operand.vmem [shape: f32[3,1,32], index: 3, kind: input, shape index: {}]   ;;  %s3409_s4 = inlined_call_operand.vmem [shape: f32[1,32], index: 4, kind: input, shape index: {}]   ;;  %s3410_s5 = inlined_call_operand.vmem [shape: f32[8,2,32], index: 5, kind: output, shape index: {0}]   ;;  %s3411_s6 = inlined_call_operand.hbm [shape: f32[2,32], index: 6, kind: output, shape index: {1}]  }
   0x1   :  { %s2895_s23 = smov 0  }
   0x2 LB: > { %s2267_s24 = sadd.s32 4294967295, %s2850_s23   ;;  %s27_s25 = sadd.s32 1, %s2846_s22  ;;  %s2850_s23 = sphi %s2895_s23, %s18_s23   ;;  %s2846_s22 = sphi %s2893_s22, %s3414_s22   ;;  %s2842_s21 = sphi %s2891_s21, %s3413_s21  }
   0x3   : > { %p28_p0 = scmp.ge.s32.totalorder %s27_s25, 2  ;;  %p2271_p1 = scmp.ge.s32.totalorder %s2850_s23, 1 }
   0x4   : > { %p236_p2 = scmp.lt.s32.totalorder %s2850_s23, 3 }
   0x5   : > { %s3416_s25 = smov (%p28_p0, %s27_s25), 0 }
   0x6   : > { %p237_p3 = pnand %p2271_p1, %p236_p2 }
   0x7   : > { %s2272_s26 = sshll.u32 (!%p237_p3), %s2842_s21, 2  ;;  %p2276_p5 = scmp.ne.s32.totalorder (!%p237_p3), %s2842_s21, 0 }
   0x8   : > { %240 = sbr.rel (%p237_p3) target bundleno = 1061 (0x425), region = 40  ;;  %p273_p4 = scmp.lt.s32.totalorder (!%p237_p3), %s2272_s26, 7 }
   0xd   : > { %s3418_s26 = smov (!%p273_p4, %s2272_s26), 7  ;;  %293 = sbr.rel (%p2276_p5) target bundleno = 20 (0x14), region = 44 }
   0xe   : > { %s2273_s27 = sshll.u32 %s3418_s26, 1 }
   0xf   : > { %s2916_s30 = scalar_lea.vmem %s3405_s0, %s2273_s27  ;;  %s2921_s9 = scalar_lea.vmem %s3410_s5, %s2273_s27 }
  0x12   : > { %vm294_vm0 = vcmask 254976   ;;  %v2852_v0 = vmov 0.0  }
  0x13   : > { %295 = vst.msk [vmem:[#allocation2] sm:$0x3] %vm294_vm0, %v2852_v0 }
  0x14 PF: > { %v2927_v1 = vld [vmem:[%s3406_s1 + $0x18] sm:$0xff]  ;;  %v2853_v3 = vmov 0.0   ;;  %v2939_v4 = vld [vmem:[%s3406_s1 + $0x10] sm:$0xff]  ;;  %v2953_v6 = vld [vmem:[%s3406_s1 + $0x8] sm:$0xff]  ;;  %vm338_vm1 = vcmask 261120   ;;  %vm2854_vm2 = vmmov 0  }
  0x15   : > { %v2932_v2 = vld [vmem:[%s3406_s1 + $0x38] sm:$0xff]  ;;  %2462 = vmatprep.subr.mxu0 %v2853_v3  ;;  %2473 = vmatprep.subr.mxu1 %v2853_v3  ;;  %v2944_v5 = vld [vmem:[%s3406_s1 + $0x30] sm:$0xff]  ;;  %v2958_v7 = vld [vmem:[%s3406_s1 + $0x28] sm:$0xff]  ;;  %vm803_vm3 = vcmask 254976   ;;  %p2337_p6 = scmp.ne.s32.totalorder %s2842_s21, 1 }
  0x16   : > { %2463 = vmatpush3.msra.mxu0 %v2927_v1  ;;  %2474 = vmatpush3.msra.mxu1 %v2932_v2  ;;  %v2967_v8 = vld [vmem:[%s3406_s1] sm:$0xff]  ;;  %v2988_v11 = vld [vmem:[%s3406_s1 + $0x58] sm:$0xff]  ;;  %v3002_v13 = vld [vmem:[%s3406_s1 + $0x50] sm:$0xff] }
  0x17   : > { %2464 = vmatprep.subr.mxu0 %v2853_v3  ;;  %2475 = vmatprep.subr.mxu1 %v2853_v3  ;;  %v2972_v9 = vld [vmem:[%s3406_s1 + $0x20] sm:$0xff]  ;;  %v2993_v12 = vld [vmem:[%s3407_s2 + $0x18] sm:$0xff]  ;;  %v3007_v14 = vld [vmem:[%s3407_s2 + $0x10] sm:$0xff] }
  0x18   : > { %2465 = vmatpush3.msra.mxu0 %v2939_v4  ;;  %2476 = vmatpush3.msra.mxu1 %v2944_v5  ;;  %v331_v10 = vld [vmem:[%s2916_s30] sm:$0x3]  ;;  %v3016_v15 = vld [vmem:[%s3406_s1 + $0x48] sm:$0xff]  ;;  %v3052_v20 = vld [vmem:[%s3407_s2 + $0x38] sm:$0xff] }
  0x19   : > { %2466 = vmatprep.subr.mxu0 %v2853_v3  ;;  %2477 = vmatprep.subr.mxu1 %v2853_v3  ;;  %v3021_v16 = vld [vmem:[%s3407_s2 + $0x8] sm:$0xff]  ;;  %v3030_v17 = vld [vmem:[%s3406_s1 + $0x40] sm:$0xff]  ;;  %v3060_v21 = vld [vmem:[%s3407_s2 + $0x58] sm:$0xff] }
  0x1a   : > { %2467 = vmatpush3.msra.mxu0 %v2953_v6  ;;  %2478 = vmatpush3.msra.mxu1 %v2958_v7  ;;  %v3035_v18 = vld [vmem:[%s3407_s2] sm:$0xff]  ;;  %v3066_v22 = vld [vmem:[%s3407_s2 + $0x30] sm:$0xff]  ;;  %v3081_v24 = vld [vmem:[%s3407_s2 + $0x28] sm:$0xff] }
  0x1b   : > { %2468 = vmatprep.subr.mxu0 %v2853_v3  ;;  %2479 = vmatprep.subr.mxu1 %v2853_v3  ;;  %v3041_v19 = vld [vmem:[#allocation2] sm:$0x3]  ;;  %v3075_v23 = vld [vmem:[%s3407_s2 + $0x50] sm:$0xff]  ;;  %v3089_v25 = vld [vmem:[%s3407_s2 + $0x48] sm:$0xff] }
  0x1c   : > { %2469 = vmatpush3.msra.mxu0 %v2967_v8  ;;  %2480 = vmatpush3.msra.mxu1 %v2972_v9  ;;  %v3095_v26 = vld [vmem:[%s3407_s2 + $0x20] sm:$0xff] }
  0x1d   : > { %2481 = vmatprep.mubr.msk.f32.mxu1 %vm2854_vm2, %v2853_v3  ;;  %2470 = vmatprep.mubr.msk.f32.mxu0 %vm2854_vm2, %v2853_v3  ;;  %v3103_v27 = vld [vmem:[%s3407_s2 + $0x40] sm:$0xff] }
  0x1e   : > { %2482 = vmatmul.mubr.msk.f32.vlgmr.msra.gmra.mxu1 %vm338_vm1, %v331_v10  ;;  %2484 = vmatprep.subr.mxu0 %v2853_v3  ;;  %v2307_v28 = vld [vmem:[%s2916_s30 + $0x2] sm:$0x3]  ;;  %v3175_v33 = vld [vmem:[%s3408_s3] ss:$0 sm:$0xff]  ;;  %v3181_v41 = vld [vmem:[%s3408_s3 + $0x1] ss:$0 sm:$0xff] }
  0x1f   : > { %2495 = vmatprep.subr.mxu1 %v2853_v3  ;;  %2471 = vmatmul.mubr.msk.f32.vlgmr.msra.gmra.mxu0 %vm338_vm1, %v331_v10  ;;  %v3187_v51 = vld [vmem:[%s3409_s4] ss:$0 sm:$0xff]  ;;  %v3193_v53 = vld [vmem:[%s3408_s3 + $0x2] ss:$0 sm:$0xff] }
  0x20   : > { %2485 = vmatpush3.msra.mxu0 %v2988_v11  ;;  %2496 = vmatpush3.msra.mxu1 %v2993_v12 }
  0x21   : > { %2486 = vmatprep.subr.mxu0 %v2853_v3  ;;  %2497 = vmatprep.subr.mxu1 %v2853_v3 }
  0x22   : > { %2487 = vmatpush3.msra.mxu0 %v3002_v13  ;;  %2498 = vmatpush3.msra.mxu1 %v3007_v14 }
  0x23   : > { %2488 = vmatprep.subr.mxu0 %v2853_v3  ;;  %2499 = vmatprep.subr.mxu1 %v2853_v3 }
  0x24   : > { %2489 = vmatpush3.msra.mxu0 %v3016_v15  ;;  %2500 = vmatpush3.msra.mxu1 %v3021_v16 }
  0x25   : > { %2490 = vmatprep.subr.mxu0 %v2853_v3  ;;  %2501 = vmatprep.subr.mxu1 %v2853_v3 }
  0x26   : > { %2491 = vmatpush3.msra.mxu0 %v3030_v17  ;;  %2502 = vmatpush3.msra.mxu1 %v3035_v18 }
  0x27   : > { %2503 = vmatprep.mubr.msk.f32.mxu1 %vm2854_vm2, %v2853_v3  ;;  %2492 = vmatprep.mubr.msk.f32.mxu0 %vm2854_vm2, %v2853_v3 }
  0x28   : > { %2504 = vmatmul.mubr.msk.f32.vlgmr.msra.gmra.mxu1 %vm338_vm1, %v3041_v19  ;;  %2506 = vmatprep.subr.mxu0 %v2853_v3 }
  0x29   : > { %2493 = vmatmul.mubr.msk.f32.vlgmr.msra.gmra.mxu0 %vm338_vm1, %v331_v10  ;;  %2517 = vmatprep.subr.mxu1 %v2853_v3 }
  0x2a   : > { %2507 = vmatpush3.msra.mxu0 %v3052_v20  ;;  %2514 = vmatprep.mubr.msk.f32.mxu0 %vm2854_vm2, %v2853_v3 }
  0x2b   : > { %2508 = vmatprep.subr.mxu0 %v2853_v3  ;;  %2518 = vmatpush3.msra.mxu1 %v3060_v21 }
  0x2c   : > { %2509 = vmatpush3.msra.mxu0 %v3066_v22  ;;  %2519 = vmatprep.subr.mxu1 %v2853_v3 }
  0x2d   : > { %2510 = vmatprep.subr.mxu0 %v2853_v3  ;;  %2520 = vmatpush3.msra.mxu1 %v3075_v23 }
  0x2e   : > { %2511 = vmatpush3.msra.mxu0 %v3081_v24  ;;  %2521 = vmatprep.subr.mxu1 %v2853_v3 }
  0x2f   : > { %2512 = vmatprep.subr.mxu0 %v2853_v3  ;;  %2522 = vmatpush3.msra.mxu1 %v3089_v25 }
  0x30   : > { %2513 = vmatpush3.msra.mxu0 %v3095_v26  ;;  %2523 = vmatprep.subr.mxu1 %v2853_v3 }
  0x31   : > { %2515 = vmatmul.mubr.msk.f32.vlgmr.msra.gmra.mxu0 %vm338_vm1, %v3041_v19  ;;  %2524 = vmatpush3.msra.mxu1 %v3103_v27 }
  0x32   : > { %2525 = vmatprep.mubr.msk.f32.mxu1 %vm2854_vm2, %v2853_v3  ;;  %2528 = vmatprep.subr.mxu0 %v2853_v3 }
  0x33   : > { %2526 = vmatmul.mubr.msk.f32.vlgmr.msra.gmra.mxu1 %vm338_vm1, %v3041_v19  ;;  %2529 = vmatpush3.msra.mxu0 %v2927_v1 }
  0x34   : > { %2530 = vmatprep.subr.mxu0 %v2853_v3  ;;  %2539 = vmatprep.subr.mxu1 %v2853_v3 }
  0x35   : > { %2531 = vmatpush3.msra.mxu0 %v2939_v4  ;;  %2536 = vmatprep.mubr.msk.f32.mxu0 %vm2854_vm2, %v2853_v3 }
  0x36   : > { %2532 = vmatprep.subr.mxu0 %v2853_v3  ;;  %2540 = vmatpush3.msra.mxu1 %v2932_v2 }
  0x37   : > { %2533 = vmatpush3.msra.mxu0 %v2953_v6  ;;  %2541 = vmatprep.subr.mxu1 %v2853_v3 }
  0x38   : > { %2534 = vmatprep.subr.mxu0 %v2853_v3  ;;  %2542 = vmatpush3.msra.mxu1 %v2944_v5 }
  0x39   : > { %2535 = vmatpush3.msra.mxu0 %v2967_v8  ;;  %2543 = vmatprep.subr.mxu1 %v2853_v3 }
  0x3a   : > { %2550 = vmatprep.subr.mxu0 %v2853_v3  ;;  %2544 = vmatpush3.msra.mxu1 %v2958_v7 }
  0x3b   : > { %2545 = vmatprep.subr.mxu1 %v2853_v3  ;;  %2547 = vmatprep.mubr.msk.f32.mxu1 %vm2854_vm2, %v2853_v3 }
  0x3c   : > { %2546 = vmatpush3.msra.mxu1 %v2972_v9  ;;  %2537 = vmatmul.mubr.msk.f32.vlgmr.msra.gmra.mxu0 %vm338_vm1, %v2307_v28 }
  0x3d   : > { %2561 = vmatprep.subr.mxu1 %v2853_v3  ;;  %2548 = vmatmul.mubr.msk.f32.vlgmr.msra.gmra.mxu1 %vm338_vm1, %v2307_v28 }
  0x3e   : > { %2551 = vmatpush3.msra.mxu0 %v2988_v11  ;;  %2558 = vmatprep.mubr.msk.f32.mxu0 %vm2854_vm2, %v2853_v3 }
  0x3f   : > { %2552 = vmatprep.subr.mxu0 %v2853_v3  ;;  %2562 = vmatpush3.msra.mxu1 %v2993_v12 }
  0x40   : > { %2553 = vmatpush3.msra.mxu0 %v3002_v13  ;;  %2563 = vmatprep.subr.mxu1 %v2853_v3 }
  0x41   : > { %2554 = vmatprep.subr.mxu0 %v2853_v3  ;;  %2564 = vmatpush3.msra.mxu1 %v3007_v14 }
  0x42   : > { %2555 = vmatpush3.msra.mxu0 %v3016_v15  ;;  %2565 = vmatprep.subr.mxu1 %v2853_v3 }
  0x43   : > { %2556 = vmatprep.subr.mxu0 %v2853_v3  ;;  %2566 = vmatpush3.msra.mxu1 %v3021_v16 }
  0x44   : > { %2557 = vmatpush3.msra.mxu0 %v3030_v17  ;;  %2567 = vmatprep.subr.mxu1 %v2853_v3 }
  0x45   : > { %2572 = vmatprep.subr.mxu0 %v2853_v3  ;;  %2559 = vmatmul.mubr.msk.f32.vlgmr.msra.gmra.mxu0 %vm338_vm1, %v2307_v28 }
  0x46   : > { %2573 = vmatpush3.msra.mxu0 %v3052_v20  ;;  %2568 = vmatpush3.msra.mxu1 %v3035_v18 }
  0x47   : > { %2574 = vmatprep.subr.mxu0 %v2853_v3  ;;  %2569 = vmatprep.mubr.msk.f32.mxu1 %vm2854_vm2, %v2853_v3 }
  0x48   : > { %2575 = vmatpush3.msra.mxu0 %v3066_v22  ;;  %2580 = vmatprep.mubr.msk.f32.mxu0 %vm2854_vm2, %v2853_v3 }
  0x49   : > { %2576 = vmatprep.subr.mxu0 %v2853_v3  ;;  %2583 = vmatprep.subr.mxu1 %v2853_v3 }
  0x4a   : > { %2577 = vmatpush3.msra.mxu0 %v3081_v24 }
  0x4b   : > { %2578 = vmatprep.subr.mxu0 %v2853_v3 }
  0x4c   : > { %2579 = vmatpush3.msra.mxu0 %v3095_v26 }
  0x4d   : > { %2594 = vmatprep.subr.mxu0 %v2853_v3 }
  0xde   : > { %v484_v29 = vpop.f32.mrf.mxu1 }
  0xdf   : > { %v408_v30 = vpop.f32.mrf.mxu0  ;;  %v485_v43 = vadd.f32 %v3181_v41, %v484_v29 }
  0xe0   : > { %v2483_v31 = vpop.f32.mrf.mxu1  ;;  %v409_v34 = vadd.f32 %v3175_v33, %v408_v30 }
  0xe1   : > { %v2472_v32 = vpop.f32.mrf.mxu0 }
  0xe2   : > { %v2317_v32 = vld [vmem:[%s2916_s30 + $0x4] sm:$0x3] }
  0xe8   : > { %v633_v35 = vpop.f32.mrf.mxu1 }
  0xe9   : > { %v707_v36 = vadd.f32 %v633_v35, %v409_v34  ;;  %v560_v37 = vpop.f32.mrf.mxu0 }
  0xea   : > { %v2505_v38 = vpop.f32.mrf.mxu1  ;;  %v561_v56 = vadd.f32 %v3193_v53, %v560_v37 }
  0xeb   : > { %v2303_v39 = vmul.f32 -1.442695, %v707_v36  ;;  %v2494_v40 = vpop.f32.mrf.mxu0 }
  0xed   : > { %2760 = vpow2.f32 %v2303_v39 }
  0xf1   : > { %v703_v42 = vpop.f32.mrf.mxu0 }
  0xf2   : > { %v714_v46 = vadd.f32 %v703_v42, %v485_v43 }
  0xf3   : > { %v2516_v44 = vpop.f32.mrf.mxu0  ;;  %v793_v45 = vpop.f32.mrf.mxu1 }
  0xf4   : > { %v2304_v48 = vmul.f32 -1.442695, %v714_v46  ;;  %v794_v52 = vadd.f32 %v3187_v51, %v793_v45 }
  0xf5   : > { %v2527_v47 = vpop.f32.mrf.mxu1 }
  0xf6   : > { %2762 = vpow2.f32 %v2304_v48 }
  0xfa   : > { %v2761_v49 = vpop.eup %2760 }
  0xfb   : > { %v711_v50 = vadd.f32 1.0, %v2761_v49 }
  0xfd   : > { %2764 = vrcp.f32 %v711_v50  ;;  %v946_v10 = vpop.f32.mrf.mxu1 }
  0xfe   : > { %v947_v43 = vadd.f32 %v3181_v41, %v946_v10 }
  0xff   : > { %v2549_v28 = vpop.f32.mrf.mxu1 }
 0x103   : > { %v2763_v54 = vpop.eup %2762 }
 0x104   : > { %v718_v58 = vadd.f32 1.0, %v2763_v54 }
 0x10a   : > { %v2765_v55 = vpop.eup %2764 }
 0x10b   : > { %v797_v57 = vmul.f32 %v2765_v55, %v794_v52 }
 0x10d   : > { %v798_v59 = vadd.f32 %v797_v57, %v561_v56 }
 0x10f   : > { %2766 = vtanh.f32 %v798_v59 }
 0x110   : > { %2768 = vrcp.f32 %v718_v58 }
 0x11c   : > { %v2767_v60 = vpop.eup %2766 }
 0x11d   : > { %v800_v61 = vsub.f32 %v3041_v19, %v2767_v60  ;;  %v2769_v62 = vpop.eup %2768  ;;  %v876_v19 = vpop.f32.mrf.mxu0 }
 0x11e   : > { %v877_v34 = vadd.f32 %v3175_v33, %v876_v19 }
 0x11f   : > { %v801_v63 = vmul.f32 %v2769_v62, %v800_v61  ;;  %v2538_v29 = vpop.f32.mrf.mxu0 }
 0x121   : > { %v3197_v0 = vadd.f32 %v2767_v60, %v801_v63  ;;  %v1016_v30 = vpop.f32.mrf.mxu0 }
 0x122   : > { %v1017_v54 = vadd.f32 %v3193_v53, %v1016_v30 }
 0x123   : > { %804 = vst.msk [vmem:[%s2921_s9] sm:$0x3] %vm803_vm3, %v3197_v0  ;;  %2570 = vmatmul.mubr.msk.f32.vlgmr.msra.gmra.mxu1 %vm338_vm1, %v3197_v0  ;;  %2581 = vmatmul.mubr.msk.f32.vlgmr.msra.gmra.mxu0 %vm338_vm1, %v3197_v0  ;;  %v2560_v31 = vpop.f32.mrf.mxu0 }
 0x124   : > { %2584 = vmatpush3.msra.mxu1 %v3060_v21  ;;  %2591 = vmatprep.mubr.msk.f32.mxu1 %vm2854_vm2, %v2853_v3 }
 0x125   : > { %2585 = vmatprep.subr.mxu1 %v2853_v3  ;;  %2595 = vmatpush3.msra.mxu0 %v2927_v1 }
 0x126   : > { %2586 = vmatpush3.msra.mxu1 %v3075_v23  ;;  %2596 = vmatprep.subr.mxu0 %v2853_v3 }
 0x127   : > { %2587 = vmatprep.subr.mxu1 %v2853_v3  ;;  %2597 = vmatpush3.msra.mxu0 %v2939_v4 }
 0x128   : > { %2588 = vmatpush3.msra.mxu1 %v3089_v25  ;;  %2598 = vmatprep.subr.mxu0 %v2853_v3 }
 0x129   : > { %2589 = vmatprep.subr.mxu1 %v2853_v3  ;;  %2599 = vmatpush3.msra.mxu0 %v2953_v6 }
 0x12a   : > { %2590 = vmatpush3.msra.mxu1 %v3103_v27  ;;  %2600 = vmatprep.subr.mxu0 %v2853_v3 }
 0x12b   : > { %2592 = vmatmul.mubr.msk.f32.vlgmr.msra.gmra.mxu1 %vm338_vm1, %v3197_v0  ;;  %2601 = vmatpush3.msra.mxu0 %v2967_v8 }
 0x12c   : > { %2605 = vmatprep.subr.mxu1 %v2853_v3  ;;  %2602 = vmatprep.mubr.msk.f32.mxu0 %vm2854_vm2, %v2853_v3 }
 0x12d   : > { %2606 = vmatpush3.msra.mxu1 %v2932_v2  ;;  %2616 = vmatprep.subr.mxu0 %v2853_v3 }
 0x12e   : > { %2607 = vmatprep.subr.mxu1 %v2853_v3  ;;  %2613 = vmatprep.mubr.msk.f32.mxu1 %vm2854_vm2, %v2853_v3 }
 0x12f   : > { %2608 = vmatpush3.msra.mxu1 %v2944_v5  ;;  %2603 = vmatmul.mubr.msk.f32.vlgmr.msra.gmra.mxu0 %vm338_vm1, %v2317_v32 }
 0x130   : > { %2609 = vmatprep.subr.mxu1 %v2853_v3  ;;  %2617 = vmatpush3.msra.mxu0 %v2988_v11 }
 0x131   : > { %2610 = vmatpush3.msra.mxu1 %v2958_v7  ;;  %2624 = vmatprep.mubr.msk.f32.mxu0 %vm2854_vm2, %v2853_v3 }
 0x132   : > { %2611 = vmatprep.subr.mxu1 %v2853_v3  ;;  %2618 = vmatprep.subr.mxu0 %v2853_v3 }
 0x133   : > { %2612 = vmatpush3.msra.mxu1 %v2972_v9  ;;  %2619 = vmatpush3.msra.mxu0 %v3002_v13 }
 0x134   : > { %2627 = vmatprep.subr.mxu1 %v2853_v3  ;;  %2614 = vmatmul.mubr.msk.f32.vlgmr.msra.gmra.mxu1 %vm338_vm1, %v2317_v32 }
 0x135   : > { %2628 = vmatpush3.msra.mxu1 %v2993_v12  ;;  %2620 = vmatprep.subr.mxu0 %v2853_v3 }
 0x136   : > { %2629 = vmatprep.subr.mxu1 %v2853_v3  ;;  %2621 = vmatpush3.msra.mxu0 %v3016_v15 }
 0x137   : > { %2630 = vmatpush3.msra.mxu1 %v3007_v14  ;;  %2622 = vmatprep.subr.mxu0 %v2853_v3 }
 0x138   : > { %2631 = vmatprep.subr.mxu1 %v2853_v3  ;;  %2623 = vmatpush3.msra.mxu0 %v3030_v17 }
 0x139   : > { %2632 = vmatpush3.msra.mxu1 %v3021_v16  ;;  %2638 = vmatprep.subr.mxu0 %v2853_v3 }
 0x13a   : > { %2633 = vmatprep.subr.mxu1 %v2853_v3  ;;  %2625 = vmatmul.mubr.msk.f32.vlgmr.msra.gmra.mxu0 %vm338_vm1, %v2317_v32 }
 0x13b   : > { %2639 = vmatpush3.msra.mxu0 %v3052_v20  ;;  %2634 = vmatpush3.msra.mxu1 %v3035_v18 }
 0x13c   : > { %2640 = vmatprep.subr.mxu0 %v2853_v3  ;;  %2635 = vmatprep.mubr.msk.f32.mxu1 %vm2854_vm2, %v2853_v3 }
 0x13d   : > { %2641 = vmatpush3.msra.mxu0 %v3066_v22  ;;  %2646 = vmatprep.mubr.msk.f32.mxu0 %vm2854_vm2, %v2853_v3 }
 0x13e   : > { %2642 = vmatprep.subr.mxu0 %v2853_v3  ;;  %2649 = vmatprep.subr.mxu1 %v2853_v3 }
 0x13f   : > { %2643 = vmatpush3.msra.mxu0 %v3081_v24 }
 0x140   : > { %2644 = vmatprep.subr.mxu0 %v2853_v3 }
 0x141   : > { %2645 = vmatpush3.msra.mxu0 %v3095_v26 }
 0x142   : > { %2660 = vmatprep.subr.mxu0 %v2853_v3 }
 0x1e3   : > { %v1089_v35 = vpop.f32.mrf.mxu1  ;;  %v1159_v36 = vpop.f32.mrf.mxu0 }
 0x1e4   : > { %v1163_v37 = vadd.f32 %v1089_v35, %v877_v34  ;;  %v1170_v45 = vadd.f32 %v1159_v36, %v947_v43 }
 0x1e5   : > { %v2571_v38 = vpop.f32.mrf.mxu1  ;;  %v2582_v39 = vpop.f32.mrf.mxu0 }
 0x1e6   : > { %v2313_v40 = vmul.f32 -1.442695, %v1163_v37  ;;  %v2314_v46 = vmul.f32 -1.442695, %v1170_v45 }
 0x1e8   : > { %2770 = vpow2.f32 %v2313_v40 }
 0x1e9   : > { %2772 = vpow2.f32 %v2314_v46 }
 0x1eb   : > { %v1243_v42 = vpop.f32.mrf.mxu1 }
 0x1ec   : > { %v1244_v50 = vadd.f32 %v3187_v51, %v1243_v42 }
 0x1ed   : > { %v2593_v44 = vpop.f32.mrf.mxu1 }
 0x1f5   : > { %v2771_v47 = vpop.eup %2770 }
 0x1f6   : > { %v1167_v48 = vadd.f32 1.0, %v2771_v47  ;;  %v2773_v49 = vpop.eup %2772 }
 0x1f7   : > { %v1174_v56 = vadd.f32 1.0, %v2773_v49 }
 0x1f8   : > { %2774 = vrcp.f32 %v1167_v48 }
 0x205   : > { %v2775_v52 = vpop.eup %2774 }
 0x206   : > { %v1247_v55 = vmul.f32 %v2775_v52, %v1244_v50 }
 0x208   : > { %v1248_v57 = vadd.f32 %v1247_v55, %v1017_v54 }
 0x20a   : > { %2776 = vtanh.f32 %v1248_v57 }
 0x20b   : > { %2778 = vrcp.f32 %v1174_v56 }
 0x217   : > { %v2777_v58 = vpop.eup %2776 }
 0x218   : > { %v1250_v59 = vsub.f32 %v3197_v0, %v2777_v58  ;;  %v2779_v60 = vpop.eup %2778  ;;  %v2327_v0 = vld [vmem:[%s2916_s30 + $0x6] sm:$0x3] }
 0x21a   : > { %v1251_v61 = vmul.f32 %v2779_v60, %v1250_v59 }
 0x21c   : > { %v3277_v62 = vadd.f32 %v2777_v58, %v1251_v61 }
 0x21e   : > { %2316 = vst.msk [vmem:[%s2921_s9 + $0x2] sm:$0x3] %vm803_vm3, %v3277_v62  ;;  %2636 = vmatmul.mubr.msk.f32.vlgmr.msra.gmra.mxu1 %vm338_vm1, %v3277_v62  ;;  %2647 = vmatmul.mubr.msk.f32.vlgmr.msra.gmra.mxu0 %vm338_vm1, %v3277_v62 }
 0x21f   : > { %2650 = vmatpush3.msra.mxu1 %v3060_v21  ;;  %2657 = vmatprep.mubr.msk.f32.mxu1 %vm2854_vm2, %v2853_v3 }
 0x220   : > { %2651 = vmatprep.subr.mxu1 %v2853_v3  ;;  %2661 = vmatpush3.msra.mxu0 %v2927_v1  ;;  %v1396_v1 = vpop.f32.mrf.mxu1 }
 0x221   : > { %2652 = vmatpush3.msra.mxu1 %v3075_v23  ;;  %2662 = vmatprep.subr.mxu0 %v2853_v3 }
 0x222   : > { %2653 = vmatprep.subr.mxu1 %v2853_v3  ;;  %2663 = vmatpush3.msra.mxu0 %v2939_v4  ;;  %v2615_v4 = vpop.f32.mrf.mxu1 }
 0x223   : > { %2654 = vmatpush3.msra.mxu1 %v3089_v25  ;;  %2664 = vmatprep.subr.mxu0 %v2853_v3 }
 0x224   : > { %2655 = vmatprep.subr.mxu1 %v2853_v3  ;;  %2665 = vmatpush3.msra.mxu0 %v2953_v6 }
 0x225   : > { %2656 = vmatpush3.msra.mxu1 %v3103_v27  ;;  %2666 = vmatprep.subr.mxu0 %v2853_v3 }
 0x226   : > { %2658 = vmatmul.mubr.msk.f32.vlgmr.msra.gmra.mxu1 %vm338_vm1, %v3277_v62  ;;  %2667 = vmatpush3.msra.mxu0 %v2967_v8 }
 0x227   : > { %2671 = vmatprep.subr.mxu1 %v2853_v3  ;;  %2668 = vmatprep.mubr.msk.f32.mxu0 %vm2854_vm2, %v2853_v3 }
 0x228   : > { %2672 = vmatpush3.msra.mxu1 %v2932_v2  ;;  %2682 = vmatprep.subr.mxu0 %v2853_v3  ;;  %v1326_v2 = vpop.f32.mrf.mxu0 }
 0x229   : > { %2673 = vmatprep.subr.mxu1 %v2853_v3  ;;  %2679 = vmatprep.mubr.msk.f32.mxu1 %vm2854_vm2, %v2853_v3 }
 0x22a   : > { %2674 = vmatpush3.msra.mxu1 %v2944_v5  ;;  %v2604_v6 = vpop.f32.mrf.mxu0  ;;  %2669 = vmatmul.mubr.msk.f32.vlgmr.msra.gmra.mxu0 %vm338_vm1, %v2327_v0  ;;  %v1327_v5 = vadd.f32 %v3175_v33, %v1326_v2 }
 0x22b   : > { %2675 = vmatprep.subr.mxu1 %v2853_v3  ;;  %2683 = vmatpush3.msra.mxu0 %v2988_v11 }
 0x22c   : > { %2676 = vmatpush3.msra.mxu1 %v2958_v7  ;;  %v1466_v8 = vpop.f32.mrf.mxu0  ;;  %2690 = vmatprep.mubr.msk.f32.mxu0 %vm2854_vm2, %v2853_v3 }
 0x22d   : > { %2677 = vmatprep.subr.mxu1 %v2853_v3  ;;  %2684 = vmatprep.subr.mxu0 %v2853_v3  ;;  %v1467_v28 = vadd.f32 %v3193_v53, %v1466_v8 }
 0x22e   : > { %2678 = vmatpush3.msra.mxu1 %v2972_v9  ;;  %v2626_v63 = vpop.f32.mrf.mxu0  ;;  %2685 = vmatpush3.msra.mxu0 %v3002_v13 }
 0x22f   : > { %2693 = vmatprep.subr.mxu1 %v2853_v3  ;;  %2680 = vmatmul.mubr.msk.f32.vlgmr.msra.gmra.mxu1 %vm338_vm1, %v2327_v0 }
 0x230   : > { %2694 = vmatpush3.msra.mxu1 %v2993_v12  ;;  %2686 = vmatprep.subr.mxu0 %v2853_v3 }
 0x231   : > { %2695 = vmatprep.subr.mxu1 %v2853_v3  ;;  %2687 = vmatpush3.msra.mxu0 %v3016_v15 }
 0x232   : > { %2696 = vmatpush3.msra.mxu1 %v3007_v14  ;;  %2688 = vmatprep.subr.mxu0 %v2853_v3 }
 0x233   : > { %2697 = vmatprep.subr.mxu1 %v2853_v3  ;;  %2689 = vmatpush3.msra.mxu0 %v3030_v17 }
 0x234   : > { %2698 = vmatpush3.msra.mxu1 %v3021_v16  ;;  %2704 = vmatprep.subr.mxu0 %v2853_v3  ;;  %v1397_v16 = vadd.f32 %v3181_v41, %v1396_v1 }
 0x235   : > { %2699 = vmatprep.subr.mxu1 %v2853_v3  ;;  %2691 = vmatmul.mubr.msk.f32.vlgmr.msra.gmra.mxu0 %vm338_vm1, %v2327_v0 }
 0x236   : > { %2705 = vmatpush3.msra.mxu0 %v3052_v20  ;;  %2700 = vmatpush3.msra.mxu1 %v3035_v18 }
 0x237   : > { %2706 = vmatprep.subr.mxu0 %v2853_v3  ;;  %2701 = vmatprep.mubr.msk.f32.mxu1 %vm2854_vm2, %v2853_v3 }
 0x238   : > { %2707 = vmatpush3.msra.mxu0 %v3066_v22  ;;  %2712 = vmatprep.mubr.msk.f32.mxu0 %vm2854_vm2, %v2853_v3 }
 0x239   : > { %2708 = vmatprep.subr.mxu0 %v2853_v3  ;;  %2715 = vmatprep.subr.mxu1 %v2853_v3 }
 0x23a   : > { %2709 = vmatpush3.msra.mxu0 %v3081_v24 }
 0x23b   : > { %2710 = vmatprep.subr.mxu0 %v2853_v3 }
 0x23c   : > { %2711 = vmatpush3.msra.mxu0 %v3095_v26 }
 0x2de   : > { %v1539_v7 = vpop.f32.mrf.mxu1  ;;  %v1609_v9 = vpop.f32.mrf.mxu0 }
 0x2df   : > { %v1613_v11 = vadd.f32 %v1539_v7, %v1327_v5  ;;  %v1620_v18 = vadd.f32 %v1609_v9, %v1397_v16 }
 0x2e0   : > { %v2637_v12 = vpop.f32.mrf.mxu1  ;;  %v2648_v13 = vpop.f32.mrf.mxu0 }
 0x2e1   : > { %v2323_v14 = vmul.f32 -1.442695, %v1613_v11  ;;  %v2324_v20 = vmul.f32 -1.442695, %v1620_v18 }
 0x2e3   : > { %2780 = vpow2.f32 %v2323_v14 }
 0x2e4   : > { %2782 = vpow2.f32 %v2324_v20 }
 0x2e6   : > { %v1693_v15 = vpop.f32.mrf.mxu1 }
 0x2e7   : > { %v1694_v10 = vadd.f32 %v3187_v51, %v1693_v15 }
 0x2e8   : > { %v2659_v17 = vpop.f32.mrf.mxu1 }
 0x2ea   : > { %v1776_v39 = vpop.f32.mrf.mxu0 }
 0x2eb   : > { %v1777_v44 = vadd.f32 %v3175_v33, %v1776_v39 }
 0x2ec   : > { %v2670_v40 = vpop.f32.mrf.mxu0 }
 0x2ef   : > { %v1846_v38 = vpop.f32.mrf.mxu1 }
 0x2f0   : > { %v2781_v22 = vpop.eup %2780 }
 0x2f1   : > { %v1617_v24 = vadd.f32 1.0, %v2781_v22  ;;  %v2783_v26 = vpop.eup %2782 }
 0x2f2   : > { %v1624_v30 = vadd.f32 1.0, %v2783_v26 }
 0x2f3   : > { %2784 = vrcp.f32 %v1617_v24 }
 0x2f5   : > { %v1916_v42 = vpop.f32.mrf.mxu0 }
 0x2f6   : > { %v1917_v58 = vadd.f32 %v3193_v53, %v1916_v42 }
 0x2f7   : > { %v2692_v43 = vpop.f32.mrf.mxu0 }
 0x300   : > { %v2785_v19 = vpop.eup %2784 }
 0x301   : > { %v1697_v29 = vmul.f32 %v2785_v19, %v1694_v10 }
 0x303   : > { %v1698_v31 = vadd.f32 %v1697_v29, %v1467_v28 }
 0x305   : > { %2786 = vtanh.f32 %v1698_v31 }
 0x306   : > { %2788 = vrcp.f32 %v1624_v30 }
 0x312   : > { %v2787_v32 = vpop.eup %2786 }
 0x313   : > { %v1700_v34 = vsub.f32 %v3277_v62, %v2787_v32  ;;  %v2789_v35 = vpop.eup %2788 }
 0x315   : > { %v1701_v36 = vmul.f32 %v2789_v35, %v1700_v34 }
 0x317   : > { %v1702_v37 = vadd.f32 %v2787_v32, %v1701_v36 }
 0x319   : > { %2326 = vst.msk [vmem:[%s2921_s9 + $0x4] sm:$0x3] %vm803_vm3, %v1702_v37  ;;  %2702 = vmatmul.mubr.msk.f32.vlgmr.msra.gmra.mxu1 %vm338_vm1, %v1702_v37  ;;  %2713 = vmatmul.mubr.msk.f32.vlgmr.msra.gmra.mxu0 %vm338_vm1, %v1702_v37 }
 0x31a   : > { %2716 = vmatpush3.msra.mxu1 %v3060_v21  ;;  %2723 = vmatprep.mubr.msk.f32.mxu1 %vm2854_vm2, %v2853_v3  ;;  %v2681_v21 = vpop.f32.mrf.mxu1 }
 0x31b   : > { %2717 = vmatprep.subr.mxu1 %v2853_v3 }
 0x31c   : > { %2718 = vmatpush3.msra.mxu1 %v3075_v23 }
 0x31d   : > { %2719 = vmatprep.subr.mxu1 %v2853_v3 }
 0x31e   : > { %2720 = vmatpush3.msra.mxu1 %v3089_v25 }
 0x31f   : > { %2721 = vmatprep.subr.mxu1 %v2853_v3 }
 0x320   : > { %2722 = vmatpush3.msra.mxu1 %v3103_v27  ;;  %v1847_v27 = vadd.f32 %v3181_v41, %v1846_v38 }
 0x321   : > { %2724 = vmatmul.mubr.msk.f32.vlgmr.msra.gmra.mxu1 %vm338_vm1, %v1702_v37 }
 0x3d9   : > { %v1989_v45 = vpop.f32.mrf.mxu1  ;;  %v2059_v23 = vpop.f32.mrf.mxu0 }
 0x3da   : > { %v2063_v46 = vadd.f32 %v1989_v45, %v1777_v44  ;;  %v2070_v50 = vadd.f32 %v2059_v23, %v1847_v27 }
 0x3db   : > { %v2703_v47 = vpop.f32.mrf.mxu1  ;;  %v2714_v48 = vpop.f32.mrf.mxu0 }
 0x3dc   : > { %v2333_v25 = vmul.f32 -1.442695, %v2063_v46  ;;  %v2334_v52 = vmul.f32 -1.442695, %v2070_v50 }
 0x3de   : > { %2790 = vpow2.f32 %v2333_v25 }
 0x3df   : > { %2792 = vpow2.f32 %v2334_v52 }
 0x3e1   : > { %v2143_v3 = vpop.f32.mrf.mxu1 }
 0x3e2   : > { %v2144_v33 = vadd.f32 %v3187_v51, %v2143_v3 }
 0x3e3   : > { %v2725_v49 = vpop.f32.mrf.mxu1 }
 0x3eb   : > { %v2791_v54 = vpop.eup %2790 }
 0x3ec   : > { %v2067_v55 = vadd.f32 1.0, %v2791_v54  ;;  %v2793_v56 = vpop.eup %2792 }
 0x3ed   : > { %v2074_v60 = vadd.f32 1.0, %v2793_v56 }
 0x3ee   : > { %2794 = vrcp.f32 %v2067_v55 }
 0x3fb   : > { %v2795_v57 = vpop.eup %2794 }
 0x3fc   : > { %v2147_v59 = vmul.f32 %v2795_v57, %v2144_v33 }
 0x3fe   : > { %v2148_v61 = vadd.f32 %v2147_v59, %v1917_v58 }
 0x400   : > { %2796 = vtanh.f32 %v2148_v61 }
 0x401   : > { %2798 = vrcp.f32 %v2074_v60 }
 0x40d   : > { %v2797_v41 = vpop.eup %2796 }
 0x40e   : > { %v2150_v62 = vsub.f32 %v1702_v37, %v2797_v41  ;;  %v2799_v1 = vpop.eup %2798 }
 0x410   : > { %v2151_v2 = vmul.f32 %v2799_v1, %v2150_v62  ;;  %2159 = sbr.rel (%p2337_p6) target bundleno = 1046 (0x416), region = 48 }
 0x412   : > { %v2152_v4 = vadd.f32 %v2797_v41, %v2151_v2 }
 0x414   : > { %2336 = vst.msk [vmem:[%s2921_s9 + $0x6] sm:$0x3] %vm803_vm3, %v2152_v4  ;;  %2155 = vst.msk [vmem:[#allocation2] sm:$0x3] %vm803_vm3, %v2152_v4 }
 0x415   : > { %2160 = vst.msk [vmem:[#allocation3] sm:$0x3] %vm803_vm3, %v2152_v4 }
 0x416 PF: > { %p3381_p7 = scmp.eq.s32.totalorder %s2267_s24, 1  ;;  %s2855_s15 = smov [#allocation3]  }
 0x417   : > { %s2182_s16 = sshll.u32 %s2855_s15, 4  ;;  %s2183_s16 = int_to_ptr.vmem [resolvable:$true] %s2182_s16 }
 0x418   : > { %s2800_s17 = scalar_lea.vmem %s2183_s16, 32  ;;  %p2807_p11 = scmp.lt.s32.totalorder %s2183_s16, %s2183_s16 }
 0x419   : > { %p2801_p8 = scmp.ne.s32.totalorder %s2183_s16, %s2800_s17  ;;  %p2808_p12 = scmp.lt.s32.totalorder %s2800_s17, %s2800_s17 }
 0x41b   : > { %p2802_p9 = pnand %p2801_p8, %p3381_p7  ;;  %p2809_p13 = por %p2808_p12, %p2807_p11 }
 0x41d   : > { %p2803_p10 = pneg %p2802_p9 }
 0x41f   : > { %p2810_p0 = pnand %p2809_p13, %p2803_p10 }
 0x421   : > { %2813 = shalt.err (!%p2810_p0)
}
 0x422   : > { %2727 = dma.vmem_to_hbm [thread:$0]  (%p3381_p7), %s2183_s16, 32, %s3411_s6, [#allocation4]  }
 0x423   : > { %2837 = dma.done.wait (%p3381_p7), [#allocation4], 32  }
 0x424   : > { %2839 = vsyncadd (%p3381_p7), [#allocation4], 4294967264 }
 0x425 PF: > { %s18_s23 = sadd.s32 1, %s2850_s23   ;;  %s3413_s21 = smov %s2846_s22 }
 0x426   : > { %p15_p1 = scmp.ge.s32.totalorder %s18_s23, 4   ;;  %s3414_s22 = smov %s3416_s25 }
 0x428   :  { %17 = sbr.rel (!%p15_p1) target bundleno = 2 (0x2), region = 100 }
 0x42d   :  { %2206 = vsyncpa [#allocation4], 1 }
 0x42e   :  { %2208 = vsyncpa [#allocation4 + $0x1], 1 }

</bundles_post_ra>
